<compile_context>
chip_gen: v5e
topology: v5e:2x2
jax: 0.10.0
libtpu: 0.0.40
codegen_flags: <defaults>
</compile_context>

<pallas_src>
import jax
import jax.numpy as jnp
from jax.experimental import pallas as pl
from jax.experimental.pallas import tpu as pltpu


def _copy_kernel(x_ref, o_ref):
    # Tiled identity copy: input and output tiles cover the same prefix
    # window, so the trim is handled entirely by the output extent.
    o_ref[...] = x_ref[...]


def _slice_kernel(x_ref, o_ref):
    # Small-L fallback: full lane extent per tile, static prefix slice.
    o_ref[...] = x_ref[:, : o_ref.shape[-1]]


def chomp1d(x: jax.Array, chomp_size: int) -> jax.Array:
    """Pallas equivalent of Chomp1d(chomp_size).forward(x), x of shape (N, C, L)."""
    assert x.ndim == 3, "expected (N, C, L)"
    n, c, l_in = x.shape
    # NOTE: torch's x[:, :, :-0] returns an *empty* tensor; we intentionally
    # require a positive chomp (the only way this module is used in the TCN).
    assert 0 < chomp_size < l_in, "chomp_size must be in (0, L)"
    l_out = l_in - chomp_size

    # Collapse (N, C) -> rows so sublane tiles are dense and the grid has
    # enough steps to pipeline / shard across cores.
    rows = n * c
    x2 = x.reshape(rows, l_in)

    dtype_bytes = jnp.dtype(x.dtype).itemsize
    cost = pl.CostEstimate(
        flops=0,
        transcendentals=0,
        bytes_accessed=rows * (l_in + l_out) * dtype_bytes,  # HBM read + write
    )

    if l_out >= 128:
        # ---- Lane-dense tiled identity copy ------------------------------
        tl = min(1024, (l_out // 128) * 128)      # multiple of 128
        tr = rows if rows <= 256 else 256         # full dim, or multiple of 8
        grid = (pl.cdiv(rows, tr), pl.cdiv(l_out, tl))
        out2 = pl.pallas_call(
            _copy_kernel,
            out_shape=jax.ShapeDtypeStruct((rows, l_out), x.dtype),
            grid_spec=pltpu.PrefetchScalarGridSpec(
                num_scalar_prefetch=0,
                grid=grid,
                in_specs=[pl.BlockSpec((tr, tl), lambda ri, li: (ri, li))],
                out_specs=pl.BlockSpec((tr, tl), lambda ri, li: (ri, li)),
            ),
            compiler_params=pltpu.CompilerParams(
                dimension_semantics=("parallel", "parallel")),
            cost_estimate=cost,
        )(x2)
    else:
        # ---- Small-L fallback: tile rows only, full L per block ----------
        # Cap per-tile bytes (~2 MiB) so double buffering never OOMs VMEM.
        max_rows = max(8, (2 * 1024 * 1024) // max(1, l_in * dtype_bytes))
        max_rows = (max_rows // 8) * 8
        tr = rows if rows <= max_rows else max_rows
        grid = (pl.cdiv(rows, tr),)
        out2 = pl.pallas_call(
            _slice_kernel,
            out_shape=jax.ShapeDtypeStruct((rows, l_out), x.dtype),
            grid_spec=pltpu.PrefetchScalarGridSpec(
                num_scalar_prefetch=0,
                grid=grid,
                in_specs=[pl.BlockSpec((tr, l_in), lambda ri: (ri, 0))],
                out_specs=pl.BlockSpec((tr, l_out), lambda ri: (ri, 0)),
            ),
            compiler_params=pltpu.CompilerParams(
                dimension_semantics=("parallel",)),
            cost_estimate=cost,
        )(x2)

    return out2.reshape(n, c, l_out)


if __name__ == "__main__":
    key0, key1 = jax.random.split(jax.random.PRNGKey(0))

    # Small shape consistent with TCN use: (batch=2, channels=4, seq=16),
    # chomp_size = (kernel_size-1)*dilation = 3.  Exercises the small-L path.
    N, C, L, chomp = 2, 4, 16, 3
    x = jax.random.normal(key0, (N, C, L), dtype=jnp.float32)
    out = jax.block_until_ready(chomp1d(x, chomp))
    ref = x[:, :, :-chomp]
    assert out.shape == (N, C, L - chomp), out.shape
    assert out.dtype == x.dtype
    assert jnp.array_equal(out, ref), "mismatch vs reference slice (small-L path)"

    # Also exercise the lane-tiled identity-copy path (L_out >= 128).
    x2 = jax.random.normal(key1, (2, 8, 384), dtype=jnp.float32)
    out2 = jax.block_until_ready(chomp1d(x2, 5))
    ref2 = x2[:, :, :-5]
    assert out2.shape == ref2.shape
    assert jnp.array_equal(out2, ref2), "mismatch vs reference slice (tiled path)"

    print("KERNEL_OK")
</pallas_src>

<mosaic_0001>
module attributes {stable_mosaic.version = 11 : i64} {
  func.func @_slice_kernel(%arg0: i32, %arg1: memref<8x16xf32, #tpu.memory_space<vmem>>, %arg2: memref<8x13xf32, #tpu.memory_space<vmem>>) attributes {dimension_semantics = [#tpu.dimension_semantics<parallel>], iteration_bounds = array<i64: 1>, scalar_prefetch = 0 : i64, scratch_operands = 0 : i64, tpu.core_type = #tpu.core_type<tc>, window_params = [{transform_indices = @transform_0, window_bounds = array<i64: 8, 16>}, {transform_indices = @transform_1, window_bounds = array<i64: 8, 13>}]} {
    %c0 = arith.constant 0 : index
    %c0_0 = arith.constant 0 : index
    %0 = vector.load %arg1[%c0, %c0_0] : memref<8x16xf32, #tpu.memory_space<vmem>>, vector<8x13xf32>
    %c0_1 = arith.constant 0 : index
    %c0_2 = arith.constant 0 : index
    %1 = vector.load %arg2[%c0_1, %c0_2] : memref<8x13xf32, #tpu.memory_space<vmem>>, vector<8x13xf32>
    tpu.vector_store %arg2[%c0_1, %c0_2], %0 {strides = array<i32>} : memref<8x13xf32, #tpu.memory_space<vmem>>, vector<8x13xf32>,
    return
  }
  func.func @transform_0(%arg0: i32) -> (i32, i32) {
    %c0_i32 = arith.constant 0 : i32
    %c0_i32_0 = arith.constant 0 : i32
    return %arg0, %c0_i32 : i32, i32
  }
  func.func @transform_1(%arg0: i32) -> (i32, i32) {
    %c0_i32 = arith.constant 0 : i32
    %c0_i32_0 = arith.constant 0 : i32
    return %arg0, %c0_i32 : i32, i32
  }
}

</mosaic_0001>

<bundles_post_ra>
// kernel: tpu_custom_call.1
= control target key start
LH: loop header
LB: loop body
LE: loop exit
PB: predicated region body
PF: predicated region fallthrough
CT: control target
= control target key end

     0   :  { %6 = vsyncpa [#allocation3], 0  ;;  %s115_s0 = inlined_call_operand.hbm [shape: f32[8,16], index: 0, kind: input, shape index: {}]   ;;  %s116_s1 = inlined_call_operand.hbm [shape: f32[8,13], index: 1, kind: output, shape index: {}]  }
   0x1   :  { %7 = vsyncpa [#allocation4], 0  ;;  %s13_s8 = sshll.u32 %s115_s0, 4  ;;  %s97_s9 = smov [#allocation2]   ;;  %s14_s8 = int_to_ptr.hbm [resolvable:$true] %s13_s8 }
   0x2   :  { %s15_s10 = sshll.u32 %s97_s9, 4  ;;  %s16_s10 = int_to_ptr.vmem [resolvable:$true] %s15_s10 }
   0x3   :  { %18 = dma.hbm_to_vmem [thread:$0]  %s14_s8, 128, %s16_s10, [#allocation3]  }
   0x4   :  { %93 = dma.done.wait [#allocation3], 128  }
   0x5   :  { %94 = vsyncadd [#allocation3], 4294967168  ;;  %s98_s11 = smov [#allocation5]   ;;  %s33_s15 = sshll.u32 %s116_s1, 4  ;;  %vm24_vm0 = vcmask 105472   ;;  %v23_v0 = vld [vmem:[#allocation2] sm:$0xff]  ;;  %s34_s15 = int_to_ptr.hbm [resolvable:$true] %s33_s15 }
   0x6   :  { %s31_s12 = sshll.u32 %s98_s11, 4  ;;  %25 = vst.msk [vmem:[#allocation5] sm:$0xff] %vm24_vm0, %v23_v0  ;;  %s32_s12 = int_to_ptr.vmem [resolvable:$true] %s31_s12 }
   0x7   :  { %36 = dma.vmem_to_hbm [thread:$0]  %s32_s12, 128, %s34_s15, [#allocation4]  }
   0x8   :  { %95 = dma.done.wait [#allocation4], 128  }
   0x9   :  { %96 = vsyncadd [#allocation4], 4294967168 }
   0xa   :  { %41 = vsyncpa [#allocation3], 1 }
   0xb   :  { %42 = vsyncpa [#allocation4], 1 }

</bundles_post_ra>
